<compile_context>
chip_gen: v5e
topology: v5e:2x2
jax: 0.10.0
libtpu: 0.0.40
codegen_flags: <defaults>
</compile_context>

<pallas_src>
import jax
import jax.numpy as jnp
from jax.experimental import pallas as pl
from jax.experimental.pallas import tpu as pltpu

INPUT_DIM = 10
HIDDEN_DIM = 64
OUTPUT_DIM = 128
DROPOUT_PROB = 0.2            # unused at inference time

PACKED_INPUT_DIM = 2 * INPUT_DIM    # 20: two batch rows packed per vreg row
PACKED_HIDDEN_DIM = 2 * HIDDEN_DIM  # 128
PACKED_OUTPUT_DIM = 2 * OUTPUT_DIM  # 256

BATCH_TILE_CAP = 2048         # rows of the original batch per grid step (sweepable)
MIN_SPLIT_TILE = 512          # never shrink a tile below this just to get more grid steps
COMPUTE_DTYPE = jnp.bfloat16  # MXU input dtype; accumulation stays f32


def _round_up(n, m):
    return ((n + m - 1) // m) * m


def _choose_batch_tile(B, cap=BATCH_TILE_CAP):
    """Rows (of the original batch) per grid step.

    Multiple of 16 so the packed row count (bt/2) stays sublane-aligned (8).
    Small batches -> a single grid step (no forced split: best for 1-TC v5e/v6e).
    Large batches -> prefer >=4 grid steps (2 per v7x TensorCore) but never
    shrink tiles below MIN_SPLIT_TILE rows (per-step overhead ~0.35 us).
    """
    cap = max(16, (cap // 16) * 16)
    whole = max(16, _round_up(B, 16))
    if whole <= MIN_SPLIT_TILE:
        return min(whole, cap)
    for steps in (4, 2):
        bt = _round_up(pl.cdiv(B, steps), 16)
        if MIN_SPLIT_TILE <= bt <= cap:
            return bt
    return min(whole, cap)


def ffn_kernel(x_ref,
               w1_ref, b1_ref,
               w2_ref, b2_ref,
               w3_ref, b3_ref,
               w45_ref, b45_ref,
               o_ref):
    cdt = w1_ref.dtype            # bf16 compute dtype for MXU inputs
    x = x_ref[...]                # (bt/2, 20) bf16 (cast fused into the host pad)

    # fc1 + ReLU   (dropout1: identity in eval mode)
    h = jnp.dot(x, w1_ref[...], preferred_element_type=jnp.float32) + b1_ref[...]
    h = jnp.maximum(h, 0.0)       # (bt/2, 128) f32; bias/ReLU kept f32 (safe on v5e VPU)

    # fc2 + ReLU
    h = jnp.dot(h.astype(cdt), w2_ref[...], preferred_element_type=jnp.float32) + b2_ref[...]
    h = jnp.maximum(h, 0.0)

    # fc3 + ReLU
    h = jnp.dot(h.astype(cdt), w3_ref[...], preferred_element_type=jnp.float32) + b3_ref[...]
    h = jnp.maximum(h, 0.0)

    # fc4 -> (dropout2: identity) -> fc5, folded into a single matmul (W45, b45)
    out = jnp.dot(h.astype(cdt), w45_ref[...], preferred_element_type=jnp.float32) + b45_ref[...]
    o_ref[...] = out.astype(o_ref.dtype)   # (bt/2, 256)


def _blockdiag2(w):
    """[[W, 0], [0, W]] : packs two independent batch-row streams into one matmul."""
    fin, fout = w.shape
    z = jnp.zeros((fin, fout), w.dtype)
    top = jnp.concatenate([w, z], axis=1)
    bot = jnp.concatenate([z, w], axis=1)
    return jnp.concatenate([top, bot], axis=0)


def _dup_bias(b):
    return jnp.concatenate([b, b], axis=1)   # (1, 2*out)


def prepare_params(params, compute_dtype=COMPUTE_DTYPE):
    """Host-side one-time prep: fold fc4/fc5, block-diagonal pack to 128/256 lanes, cast to bf16."""
    w45 = params["w4"] @ params["w5"]                     # (64, 128), f32 fold (exact composition)
    b45 = params["b4"] @ params["w5"] + params["b5"]      # (1, 128)
    return {
        "w1": _blockdiag2(params["w1"]).astype(compute_dtype),   # (20, 128)
        "b1": _dup_bias(params["b1"]).astype(jnp.float32),       # (1, 128)
        "w2": _blockdiag2(params["w2"]).astype(compute_dtype),   # (128, 128)
        "b2": _dup_bias(params["b2"]).astype(jnp.float32),
        "w3": _blockdiag2(params["w3"]).astype(compute_dtype),   # (128, 128)
        "b3": _dup_bias(params["b3"]).astype(jnp.float32),
        "w45": _blockdiag2(w45).astype(compute_dtype),           # (128, 256)
        "b45": _dup_bias(b45).astype(jnp.float32),               # (1, 256)
    }


def custom_ffn_v31(x, prepared, batch_tile=BATCH_TILE_CAP, out_dtype=jnp.bfloat16,
                   training=False):
    """x: (B, INPUT_DIM) float32. prepared: output of prepare_params. Returns (B, OUTPUT_DIM)."""
    if training:
        # TODO(synk): training-mode dropout needs pltpu.prng_seed/prng_random_bits mask + 1/(1-p) scale.
        raise NotImplementedError("CustomFFNv31 Pallas kernel implements eval mode only")

    B, D = x.shape
    assert D == INPUT_DIM

    bt = _choose_batch_tile(B, batch_tile)   # multiple of 16
    steps = pl.cdiv(B, bt)
    Bp = steps * bt

    # Batch-tail zero-pad fused with the f32->bf16 cast (single XLA op), then a free
    # contiguous reshape that packs row pairs: (Bp, 10) -> (Bp/2, 20).
    xp = jnp.pad(x.astype(COMPUTE_DTYPE), ((0, Bp - B), (0, 0)))
    xp = xp.reshape(Bp // 2, PACKED_INPUT_DIM)

    resident = pl.BlockSpec(memory_space=pltpu.MemorySpace.VMEM)  # whole array, VMEM-resident

    out_bytes = jnp.finfo(out_dtype).bits // 8
    cost = pl.CostEstimate(
        flops=2 * Bp * (INPUT_DIM * HIDDEN_DIM
                        + 2 * HIDDEN_DIM * HIDDEN_DIM
                        + HIDDEN_DIM * OUTPUT_DIM),
        transcendentals=0,
        bytes_accessed=Bp * (2 * INPUT_DIM + out_bytes * OUTPUT_DIM),
    )

    out = pl.pallas_call(
        ffn_kernel,
        out_shape=jax.ShapeDtypeStruct((Bp // 2, PACKED_OUTPUT_DIM), out_dtype),
        grid_spec=pltpu.PrefetchScalarGridSpec(
            num_scalar_prefetch=0,
            grid=(steps,),
            in_specs=[
                pl.BlockSpec((bt // 2, PACKED_INPUT_DIM), lambda i: (i, 0)),  # x tile (pipelined)
                resident, resident,   # w1, b1
                resident, resident,   # w2, b2
                resident, resident,   # w3, b3
                resident, resident,   # w45, b45
            ],
            out_specs=pl.BlockSpec((bt // 2, PACKED_OUTPUT_DIM), lambda i: (i, 0)),  # lane-dense 256
        ),
        compiler_params=pltpu.CompilerParams(
            dimension_semantics=("parallel",),
            vmem_limit_bytes=32 * 1024 * 1024,   # far above need (<3 MiB at bt=2048); safe everywhere
        ),
        cost_estimate=cost,
    )(xp,
      prepared["w1"], prepared["b1"],
      prepared["w2"], prepared["b2"],
      prepared["w3"], prepared["b3"],
      prepared["w45"], prepared["b45"])

    # Unpack row pairs (contiguous reshape) and drop the batch-tail padding.
    return out.reshape(Bp, OUTPUT_DIM)[:B]


def init_params(key):
    """Deterministic synthetic parameters matching the nn.Linear shapes.

    Weights are stored transposed relative to PyTorch ((in, out) instead of (out, in))
    so the kernel computes x @ W directly. Biases are (1, out) for 2-D VMEM layout.
    """
    dims = [
        ("w1", "b1", INPUT_DIM, HIDDEN_DIM),
        ("w2", "b2", HIDDEN_DIM, HIDDEN_DIM),
        ("w3", "b3", HIDDEN_DIM, HIDDEN_DIM),
        ("w4", "b4", HIDDEN_DIM, HIDDEN_DIM),
        ("w5", "b5", HIDDEN_DIM, OUTPUT_DIM),
    ]
    params = {}
    for wname, bname, fin, fout in dims:
        key, kw, kb = jax.random.split(key, 3)
        bound = 1.0 / jnp.sqrt(fin)  # mimic PyTorch Linear default uniform range
        params[wname] = jax.random.uniform(kw, (fin, fout), jnp.float32, -bound, bound)
        params[bname] = jax.random.uniform(kb, (1, fout), jnp.float32, -bound, bound)
    return params


def ffn_reference(x, params):
    """Pure-JAX f32 reference of the original forward pass (eval mode)."""
    h = jnp.maximum(x @ params["w1"] + params["b1"], 0.0)
    h = jnp.maximum(h @ params["w2"] + params["b2"], 0.0)
    h = jnp.maximum(h @ params["w3"] + params["b3"], 0.0)
    h = h @ params["w4"] + params["b4"]
    return h @ params["w5"] + params["b5"]


if __name__ == "__main__":
    key = jax.random.PRNGKey(0)
    kx, kx2, kp = jax.random.split(key, 3)

    params = init_params(kp)
    prepared = prepare_params(params)

    # Small batch, deliberately not a multiple of 16: single-grid-step path + tail slice.
    B = 37
    x = jax.random.normal(kx, (B, INPUT_DIM), jnp.float32)
    out = jax.block_until_ready(custom_ffn_v31(x, prepared))
    ref = ffn_reference(x, params)
    assert out.shape == (B, OUTPUT_DIM)
    # bf16 MXU inputs + fc4/fc5 fold + bf16 output: tolerance loosened accordingly.
    err = jnp.abs(out.astype(jnp.float32) - ref)
    assert jnp.allclose(out.astype(jnp.float32), ref, atol=1.5e-1, rtol=1.5e-1), \
        f"max abs err = {float(jnp.max(err))}"

    # Multi-grid-step path (forced tiny tile) to exercise the pipelined x/out streams.
    B2 = 100
    x2 = jax.random.normal(kx2, (B2, INPUT_DIM), jnp.float32)
    out2 = jax.block_until_ready(custom_ffn_v31(x2, prepared, batch_tile=32))
    ref2 = ffn_reference(x2, params)
    assert out2.shape == (B2, OUTPUT_DIM)
    assert jnp.allclose(out2.astype(jnp.float32), ref2, atol=1.5e-1, rtol=1.5e-1)

    print("KERNEL_OK")
</pallas_src>

<mosaic_0001>
module attributes {stable_mosaic.version = 11 : i64} {
  func.func @ffn_kernel(%arg0: i32, %arg1: memref<24x20xbf16, #tpu.memory_space<vmem>>, %arg2: memref<20x128xbf16, #tpu.memory_space<vmem>>, %arg3: memref<1x128xf32, #tpu.memory_space<vmem>>, %arg4: memref<128x128xbf16, #tpu.memory_space<vmem>>, %arg5: memref<1x128xf32, #tpu.memory_space<vmem>>, %arg6: memref<128x128xbf16, #tpu.memory_space<vmem>>, %arg7: memref<1x128xf32, #tpu.memory_space<vmem>>, %arg8: memref<128x256xbf16, #tpu.memory_space<vmem>>, %arg9: memref<1x256xf32, #tpu.memory_space<vmem>>, %arg10: memref<24x256xbf16, #tpu.memory_space<vmem>>) attributes {dimension_semantics = [#tpu.dimension_semantics<parallel>], iteration_bounds = array<i64: 1>, scalar_prefetch = 0 : i64, scratch_operands = 0 : i64, tpu.core_type = #tpu.core_type<tc>, window_params = [{transform_indices = @transform_0, window_bounds = array<i64: 24, 20>}, {pipeline_mode = #tpu.pipeline_mode<synchronous>, transform_indices = @transform_1, window_bounds = array<i64: 20, 128>}, {pipeline_mode = #tpu.pipeline_mode<synchronous>, transform_indices = @transform_2, window_bounds = array<i64: 1, 128>}, {pipeline_mode = #tpu.pipeline_mode<synchronous>, transform_indices = @transform_3, window_bounds = array<i64: 128, 128>}, {pipeline_mode = #tpu.pipeline_mode<synchronous>, transform_indices = @transform_4, window_bounds = array<i64: 1, 128>}, {pipeline_mode = #tpu.pipeline_mode<synchronous>, transform_indices = @transform_5, window_bounds = array<i64: 128, 128>}, {pipeline_mode = #tpu.pipeline_mode<synchronous>, transform_indices = @transform_6, window_bounds = array<i64: 1, 128>}, {pipeline_mode = #tpu.pipeline_mode<synchronous>, transform_indices = @transform_7, window_bounds = array<i64: 128, 256>}, {pipeline_mode = #tpu.pipeline_mode<synchronous>, transform_indices = @transform_8, window_bounds = array<i64: 1, 256>}, {transform_indices = @transform_9, window_bounds = array<i64: 24, 256>}]} {
    %c0 = arith.constant 0 : index
    %c0_0 = arith.constant 0 : index
    %0 = vector.load %arg1[%c0, %c0_0] : memref<24x20xbf16, #tpu.memory_space<vmem>>, vector<24x20xbf16>
    %c0_1 = arith.constant 0 : index
    %c0_2 = arith.constant 0 : index
    %1 = vector.load %arg2[%c0_1, %c0_2] : memref<20x128xbf16, #tpu.memory_space<vmem>>, vector<20x128xbf16>
    %cst = arith.constant dense<0.000000e+00> : vector<24x128xf32>
    %2 = tpu.matmul %0, %1, %cst {dimension_numbers = #tpu.dot_dimension_numbers<[1], [0], [0], [1], [0, 0, 1, 1], [], []>} : vector<24x20xbf16>, vector<20x128xbf16>, vector<24x128xf32> -> vector<24x128xf32>
    %c0_3 = arith.constant 0 : index
    %c0_4 = arith.constant 0 : index
    %3 = vector.load %arg3[%c0_3, %c0_4] : memref<1x128xf32, #tpu.memory_space<vmem>>, vector<1x128xf32>
    %4 = vector.broadcast %3 : vector<1x128xf32> to vector<24x128xf32>
    %5 = arith.addf %2, %4 : vector<24x128xf32>
    %cst_5 = arith.constant 0.000000e+00 : f32
    %6 = vector.broadcast %cst_5 : f32 to vector<24x128xf32>
    %7 = arith.maximumf %5, %6 : vector<24x128xf32>
    %8 = arith.truncf %7 : vector<24x128xf32> to vector<24x128xbf16>
    %c0_6 = arith.constant 0 : index
    %c0_7 = arith.constant 0 : index
    %9 = vector.load %arg4[%c0_6, %c0_7] : memref<128x128xbf16, #tpu.memory_space<vmem>>, vector<128x128xbf16>
    %cst_8 = arith.constant dense<0.000000e+00> : vector<24x128xf32>
    %10 = tpu.matmul %8, %9, %cst_8 {dimension_numbers = #tpu.dot_dimension_numbers<[1], [0], [0], [1], [0, 0, 1, 1], [], []>} : vector<24x128xbf16>, vector<128x128xbf16>, vector<24x128xf32> -> vector<24x128xf32>
    %c0_9 = arith.constant 0 : index
    %c0_10 = arith.constant 0 : index
    %11 = vector.load %arg5[%c0_9, %c0_10] : memref<1x128xf32, #tpu.memory_space<vmem>>, vector<1x128xf32>
    %12 = vector.broadcast %11 : vector<1x128xf32> to vector<24x128xf32>
    %13 = arith.addf %10, %12 : vector<24x128xf32>
    %cst_11 = arith.constant 0.000000e+00 : f32
    %14 = vector.broadcast %cst_11 : f32 to vector<24x128xf32>
    %15 = arith.maximumf %13, %14 : vector<24x128xf32>
    %16 = arith.truncf %15 : vector<24x128xf32> to vector<24x128xbf16>
    %c0_12 = arith.constant 0 : index
    %c0_13 = arith.constant 0 : index
    %17 = vector.load %arg6[%c0_12, %c0_13] : memref<128x128xbf16, #tpu.memory_space<vmem>>, vector<128x128xbf16>
    %cst_14 = arith.constant dense<0.000000e+00> : vector<24x128xf32>
    %18 = tpu.matmul %16, %17, %cst_14 {dimension_numbers = #tpu.dot_dimension_numbers<[1], [0], [0], [1], [0, 0, 1, 1], [], []>} : vector<24x128xbf16>, vector<128x128xbf16>, vector<24x128xf32> -> vector<24x128xf32>
    %c0_15 = arith.constant 0 : index
    %c0_16 = arith.constant 0 : index
    %19 = vector.load %arg7[%c0_15, %c0_16] : memref<1x128xf32, #tpu.memory_space<vmem>>, vector<1x128xf32>
    %20 = vector.broadcast %19 : vector<1x128xf32> to vector<24x128xf32>
    %21 = arith.addf %18, %20 : vector<24x128xf32>
    %cst_17 = arith.constant 0.000000e+00 : f32
    %22 = vector.broadcast %cst_17 : f32 to vector<24x128xf32>
    %23 = arith.maximumf %21, %22 : vector<24x128xf32>
    %24 = arith.truncf %23 : vector<24x128xf32> to vector<24x128xbf16>
    %c0_18 = arith.constant 0 : index
    %c0_19 = arith.constant 0 : index
    %25 = vector.load %arg8[%c0_18, %c0_19] : memref<128x256xbf16, #tpu.memory_space<vmem>>, vector<128x256xbf16>
    %cst_20 = arith.constant dense<0.000000e+00> : vector<24x256xf32>
    %26 = tpu.matmul %24, %25, %cst_20 {dimension_numbers = #tpu.dot_dimension_numbers<[1], [0], [0], [1], [0, 0, 1, 1], [], []>} : vector<24x128xbf16>, vector<128x256xbf16>, vector<24x256xf32> -> vector<24x256xf32>
    %c0_21 = arith.constant 0 : index
    %c0_22 = arith.constant 0 : index
    %27 = vector.load %arg9[%c0_21, %c0_22] : memref<1x256xf32, #tpu.memory_space<vmem>>, vector<1x256xf32>
    %28 = vector.broadcast %27 : vector<1x256xf32> to vector<24x256xf32>
    %29 = arith.addf %26, %28 : vector<24x256xf32>
    %30 = arith.truncf %29 : vector<24x256xf32> to vector<24x256xbf16>
    %c0_23 = arith.constant 0 : index
    %c0_24 = arith.constant 0 : index
    %31 = vector.load %arg10[%c0_23, %c0_24] : memref<24x256xbf16, #tpu.memory_space<vmem>>, vector<24x256xbf16>
    tpu.vector_store %arg10[%c0_23, %c0_24], %30 {strides = array<i32>} : memref<24x256xbf16, #tpu.memory_space<vmem>>, vector<24x256xbf16>,
    return
  }
  func.func @transform_0(%arg0: i32) -> (i32, i32) {
    %c0_i32 = arith.constant 0 : i32
    %c0_i32_0 = arith.constant 0 : i32
    return %arg0, %c0_i32 : i32, i32
  }
  func.func @transform_1(%arg0: i32) -> (i32, i32) {
    %c0_i32 = arith.constant 0 : i32
    %c0_i32_0 = arith.constant 0 : i32
    %c0_i32_1 = arith.constant 0 : i32
    return %c0_i32, %c0_i32_0 : i32, i32
  }
  func.func @transform_2(%arg0: i32) -> (i32, i32) {
    %c0_i32 = arith.constant 0 : i32
    %c0_i32_0 = arith.constant 0 : i32
    %c0_i32_1 = arith.constant 0 : i32
    return %c0_i32, %c0_i32_0 : i32, i32
  }
  func.func @transform_3(%arg0: i32) -> (i32, i32) {
    %c0_i32 = arith.constant 0 : i32
    %c0_i32_0 = arith.constant 0 : i32
    %c0_i32_1 = arith.constant 0 : i32
    return %c0_i32, %c0_i32_0 : i32, i32
  }
  func.func @transform_4(%arg0: i32) -> (i32, i32) {
    %c0_i32 = arith.constant 0 : i32
    %c0_i32_0 = arith.constant 0 : i32
    %c0_i32_1 = arith.constant 0 : i32
    return %c0_i32, %c0_i32_0 : i32, i32
  }
  func.func @transform_5(%arg0: i32) -> (i32, i32) {
    %c0_i32 = arith.constant 0 : i32
    %c0_i32_0 = arith.constant 0 : i32
    %c0_i32_1 = arith.constant 0 : i32
    return %c0_i32, %c0_i32_0 : i32, i32
  }
  func.func @transform_6(%arg0: i32) -> (i32, i32) {
    %c0_i32 = arith.constant 0 : i32
    %c0_i32_0 = arith.constant 0 : i32
    %c0_i32_1 = arith.constant 0 : i32
    return %c0_i32, %c0_i32_0 : i32, i32
  }
  func.func @transform_7(%arg0: i32) -> (i32, i32) {
    %c0_i32 = arith.constant 0 : i32
    %c0_i32_0 = arith.constant 0 : i32
    %c0_i32_1 = arith.constant 0 : i32
    return %c0_i32, %c0_i32_0 : i32, i32
  }
  func.func @transform_8(%arg0: i32) -> (i32, i32) {
    %c0_i32 = arith.constant 0 : i32
    %c0_i32_0 = arith.constant 0 : i32
    %c0_i32_1 = arith.constant 0 : i32
    return %c0_i32, %c0_i32_0 : i32, i32
  }
  func.func @transform_9(%arg0: i32) -> (i32, i32) {
    %c0_i32 = arith.constant 0 : i32
    %c0_i32_0 = arith.constant 0 : i32
    return %arg0, %c0_i32 : i32, i32
  }
}

</mosaic_0001>

<bundles_post_ra>
// kernel: tpu_custom_call.1
= control target key start
LH: loop header
LB: loop body
LE: loop exit
PB: predicated region body
PF: predicated region fallthrough
CT: control target
= control target key end

     0   :  { %14 = vsyncpa [#allocation3], 0  ;;  %s1008_s0 = inlined_call_operand.hbm [shape: bf16[24,20], index: 0, kind: input, shape index: {}]   ;;  %s1009_s1 = inlined_call_operand.hbm [shape: bf16[20,128], index: 1, kind: input, shape index: {}]   ;;  %s1010_s2 = inlined_call_operand.vmem [shape: f32[1,128], index: 2, kind: input, shape index: {}]   ;;  %s1011_s3 = inlined_call_operand.hbm [shape: bf16[128,128], index: 3, kind: input, shape index: {}]   ;;  %s1012_s4 = inlined_call_operand.hbm [shape: f32[1,128], index: 4, kind: input, shape index: {}]   ;;  %s1013_s5 = inlined_call_operand.hbm [shape: bf16[128,128], index: 5, kind: input, shape index: {}]   ;;  %s1014_s6 = inlined_call_operand.vmem [shape: f32[1,128], index: 6, kind: input, shape index: {}]   ;;  %s1015_s7 = inlined_call_operand.hbm [shape: bf16[128,256], index: 7, kind: input, shape index: {}]   ;;  %s1016_s8 = inlined_call_operand.vmem [shape: f32[1,256], index: 8, kind: input, shape index: {}]   ;;  %s1017_s9 = inlined_call_operand.hbm [shape: bf16[24,256], index: 9, kind: output, shape index: {}]  }
   0x1   :  { %15 = vsyncpa [#allocation6], 0 }
   0x2   :  { %16 = vsyncpa [#allocation9], 0 }
   0x3   :  { %17 = vsyncpa [#allocation12], 0 }
   0x4   :  { %18 = vsyncpa [#allocation4], 0  ;;  %s36_s11 = sshll.u32 %s1009_s1, 4  ;;  %s899_s12 = smov [#allocation5]   ;;  %s37_s11 = int_to_ptr.hbm [resolvable:$true] %s36_s11 }
   0x5   :  { %s38_s13 = sshll.u32 %s899_s12, 4  ;;  %s65_s16 = sshll.u32 %s1012_s4, 4  ;;  %s39_s13 = int_to_ptr.vmem [resolvable:$true] %s38_s13  ;;  %s66_s16 = int_to_ptr.hbm [resolvable:$true] %s65_s16 }
   0x6   :  { %s900_s17 = smov 64   ;;  %s901_s18 = smov 4  }
   0x7   :  { %44 = dma.hbm_to_vmem [thread:$0]  %s37_s11, 192, %s39_s13, [#allocation6], %s900_s17, %s900_s17, %s901_s18  }
   0x8   :  { %s902_s19 = smov [#allocation8]   ;;  %s23_s1 = sshll.u32 %s1008_s0, 4  ;;  %s24_s1 = int_to_ptr.hbm [resolvable:$true] %s23_s1 }
   0x9   :  { %s67_s20 = sshll.u32 %s902_s19, 4  ;;  %s51_s4 = sshll.u32 %s1011_s3, 4  ;;  %s68_s20 = int_to_ptr.vmem [resolvable:$true] %s67_s20  ;;  %s52_s4 = int_to_ptr.hbm [resolvable:$true] %s51_s4 }
   0xa   :  { %70 = dma.hbm_to_vmem [thread:$0]  %s66_s16, 16, %s68_s20, [#allocation9]  }
   0xb   :  { %s903_s25 = smov [#allocation2]   ;;  %s904_s27 = smov [#allocation7]  }
   0xc   :  { %s25_s26 = sshll.u32 %s903_s25, 4  ;;  %s53_s28 = sshll.u32 %s904_s27, 4  ;;  %s26_s26 = int_to_ptr.vmem [resolvable:$true] %s25_s26  ;;  %s54_s28 = int_to_ptr.vmem [resolvable:$true] %s53_s28 }
   0xd   :  { %31 = dma.hbm_to_vmem [thread:$0]  %s24_s1, 192, %s26_s26, [#allocation3], %s900_s17, %s900_s17, %s901_s18  }
   0xe   :  { %s75_s0 = sshll.u32 %s1013_s5, 4  ;;  %s90_s11 = sshll.u32 %s1015_s7, 4  ;;  %s76_s0 = int_to_ptr.hbm [resolvable:$true] %s75_s0  ;;  %s91_s11 = int_to_ptr.hbm [resolvable:$true] %s90_s11 }
   0xf   :  { %59 = dma.hbm_to_vmem [thread:$0]  %s52_s4, 1024, %s54_s28, [#allocation6], %s900_s17, %s900_s17, %s901_s18  }
  0x10   :  { %s905_s12 = smov [#allocation10]   ;;  %s906_s14 = smov [#allocation11]  }
  0x11   :  { %s77_s13 = sshll.u32 %s905_s12, 4  ;;  %s92_s5 = sshll.u32 %s906_s14, 4  ;;  %s78_s13 = int_to_ptr.vmem [resolvable:$true] %s77_s13  ;;  %s93_s5 = int_to_ptr.vmem [resolvable:$true] %s92_s5 }
  0x12   :  { %83 = dma.hbm_to_vmem [thread:$0]  %s76_s0, 1024, %s78_s13, [#allocation9], %s900_s17, %s900_s17, %s901_s18  }
  0x13   :  { %s907_s15 = smov 128   ;;  %s908_s16 = smov 8  }
  0x14   :  { %98 = dma.hbm_to_vmem [thread:$0]  %s91_s11, 2048, %s93_s5, [#allocation12], %s907_s15, %s907_s15, %s908_s16  }
  0x15   :  { %889 = dma.done.wait [#allocation3], 192  }
  0x16   :  { %890 = vsyncadd [#allocation3], 4294967104 }
  0x17   :  { %891 = dma.done.wait [#allocation6], 1216  }
  0x18   :  { %892 = vsyncadd [#allocation6], 4294966080 }
  0x19   :  { %893 = dma.done.wait [#allocation9], 1040  }
  0x1a   :  { %894 = vsyncadd [#allocation9], 4294966256 }
  0x1b   :  { %895 = dma.done.wait [#allocation12], 2048  }
  0x1c   :  { %896 = vsyncadd [#allocation12], 4294965248  ;;  %v131_v0 = vld [vmem:[#allocation5 + $0x8] sm:$0x3]  ;;  %vm160_vm0 = vcmask 1041408   ;;  %v681_v4 = vld [vmem:[#allocation7 + $0x30] sm:$0xff] }
  0x1d   :  { %v149_v1 = vunpack.c.l.b16 %v131_v0  ;;  %v682_v2 = vld [vmem:[#allocation7 + $0x38] sm:$0xff]  ;;  %v680_v7 = vld [vmem:[#allocation7 + $0x28] sm:$0xff]  ;;  %vm153_vm1 = vcmask 162816   ;;  %v679_v9 = vld [vmem:[#allocation7 + $0x20] sm:$0xff]  ;;  %s519_s1 = sshll.u32 %s1017_s9, 4  ;;  %s520_s1 = int_to_ptr.hbm [resolvable:$true] %s519_s1 }
  0x1e   :  { %255 = vmatpush.bf16.msra.mxu1 %v682_v2  ;;  %v674_v6 = vld [vmem:[#allocation5] sm:$0xff]  ;;  %v673_v8 = vld [vmem:[#allocation2] sm:$0xff]  ;;  %v128_v10 = vld [vmem:[#allocation2 + $0x8] sm:$0xf] }
  0x1f   :  { %v151_v3 = vpack.c.b16 %v149_v1, %v149_v1  ;;  %v141_v11 = vunpack.c.l.b16 %v128_v10  ;;  %v678_v13 = vld [vmem:[#allocation7 + $0x18] sm:$0xff]  ;;  %v677_v14 = vld [vmem:[#allocation7 + $0x10] sm:$0xff]  ;;  %v676_v15 = vld [vmem:[#allocation7 + $0x8] sm:$0xff] }
  0x20   :  { %v675_v16 = vld [vmem:[#allocation7] sm:$0xff]  ;;  %v689_v19 = vld [vmem:[#allocation10 + $0x30] sm:$0xff]  ;;  %v718_v20 = vld [vmem:[%s1010_s2] ss:$0 sm:$0xff] }
  0x21   :  { %v162_v5 = vsel %vm160_vm0, %v151_v3, 0  ;;  %v143_v12 = vpack.c.b16 %v141_v11, %v141_v11  ;;  %v690_v17 = vld [vmem:[#allocation10 + $0x38] sm:$0xff]  ;;  %v688_v21 = vld [vmem:[#allocation10 + $0x28] sm:$0xff]  ;;  %v687_v25 = vld [vmem:[#allocation10 + $0x20] sm:$0xff] }
  0x22   :  { %170 = vmatpush.bf16.msra.mxu0 %v162_v5  ;;  %256 = vmatpush.bf16.msra.mxu1 %v681_v4  ;;  %v686_v34 = vld [vmem:[#allocation10 + $0x18] sm:$0xff]  ;;  %v685_v35 = vld [vmem:[#allocation10 + $0x10] sm:$0xff]  ;;  %v684_v36 = vld [vmem:[#allocation10 + $0x8] sm:$0xff] }
  0x23   :  { %346 = vmatpush.bf16.msra.mxu2 %v690_v17  ;;  %v683_v37 = vld [vmem:[#allocation10] sm:$0xff]  ;;  %v667_v38 = vld [vmem:[#allocation11 + $0x70] sm:$0xf]  ;;  %v706_v39 = vld [vmem:[#allocation11 + $0x74] sm:$0xf0] }
  0x24   :  { %v705_v40 = vld [vmem:[#allocation11 + $0x74] sm:$0xf]  ;;  %v668_v42 = vor.u32 %v706_v39, %v667_v38  ;;  %v669_v43 = vld [vmem:[#allocation11 + $0x78] sm:$0xf0]  ;;  %v659_v44 = vld [vmem:[#allocation11 + $0x60] sm:$0xf] }
  0x25   :  { %v704_v45 = vld [vmem:[#allocation11 + $0x64] sm:$0xf0]  ;;  %v672_v46 = vor.u32 %v705_v40, %v669_v43  ;;  %v703_v47 = vld [vmem:[#allocation11 + $0x64] sm:$0xf]  ;;  %v661_v48 = vld [vmem:[#allocation11 + $0x68] sm:$0xf0] }
  0x26   :  { %171 = vmatpush.bf16.msra.mxu0 %v674_v6  ;;  %257 = vmatpush.bf16.msra.mxu1 %v680_v7  ;;  %v660_v49 = vor.u32 %v704_v45, %v659_v44  ;;  %v719_v50 = vld [vmem:[#allocation8] ss:$0 sm:$0xff]  ;;  %v664_v51 = vor.u32 %v703_v47, %v661_v48  ;;  %v651_v52 = vld [vmem:[#allocation11 + $0x50] sm:$0xf]  ;;  %v702_v53 = vld [vmem:[#allocation11 + $0x54] sm:$0xf0] }
  0x27   :  { %347 = vmatpush.bf16.msra.mxu2 %v689_v19  ;;  %471 = vmatpush.bf16.msra.mxu3 %v668_v42  ;;  %v701_v54 = vld [vmem:[#allocation11 + $0x54] sm:$0xf]  ;;  %v653_v55 = vld [vmem:[#allocation11 + $0x58] sm:$0xf0]  ;;  %v652_v56 = vor.u32 %v702_v53, %v651_v52  ;;  %v643_v59 = vld [vmem:[#allocation11 + $0x40] sm:$0xf] }
  0x28   :  { %v656_v58 = vor.u32 %v701_v54, %v653_v55  ;;  %v700_v60 = vld [vmem:[#allocation11 + $0x44] sm:$0xf0]  ;;  %v699_v62 = vld [vmem:[#allocation11 + $0x44] sm:$0xf]  ;;  %v645_v63 = vld [vmem:[#allocation11 + $0x48] sm:$0xf0] }
  0x29   :  { %543 = vmatmul.msk.bf16.vlgmr.msra.gmra.mxu0 %vm153_vm1, %v673_v8  ;;  %v644_v1 = vor.u32 %v700_v60, %v643_v59  ;;  %v648_v4 = vor.u32 %v699_v62, %v645_v63  ;;  %v635_v11 = vld [vmem:[#allocation11 + $0x30] sm:$0xf]  ;;  %v627_v17 = vld [vmem:[#allocation11 + $0x20] sm:$0xf]  ;;  %v695_v19 = vld [vmem:[#allocation11 + $0x24] sm:$0xf] }
  0x2a   :  { %258 = vmatpush.bf16.msra.mxu1 %v679_v9  ;;  %489 = vmatpush.bf16.msrb.mxu0 %v672_v46  ;;  %v385_v48 = vld [vmem:[%s1016_s8] sm:$0x3] }
  0x2b   :  { %348 = vmatpush.bf16.msra.mxu2 %v688_v21  ;;  %472 = vmatpush.bf16.msra.mxu3 %v660_v49  ;;  %v629_v21 = vld [vmem:[#allocation11 + $0x28] sm:$0xf0] }
  0x2e   :  { %259 = vmatpush.bf16.msra.mxu1 %v678_v13  ;;  %490 = vmatpush.bf16.msrb.mxu0 %v664_v51  ;;  %v697_v13 = vld [vmem:[#allocation11 + $0x34] sm:$0xf]  ;;  %v387_v51 = vperm.slane %v385_v48, 0 }
  0x2f   :  { %349 = vmatpush.bf16.msra.mxu2 %v687_v25  ;;  %473 = vmatpush.bf16.msra.mxu3 %v652_v56  ;;  %v693_v25 = vld [vmem:[#allocation11 + $0x14] sm:$0xf] }
  0x32   :  { %260 = vmatpush.bf16.msra.mxu1 %v677_v14  ;;  %491 = vmatpush.bf16.msrb.mxu0 %v656_v58 }
  0x33   :  { %350 = vmatpush.bf16.msra.mxu2 %v686_v34  ;;  %474 = vmatpush.bf16.msra.mxu3 %v644_v1 }
  0x36   :  { %261 = vmatpush.bf16.msra.mxu1 %v676_v15  ;;  %492 = vmatpush.bf16.msrb.mxu0 %v648_v4  ;;  %v637_v15 = vld [vmem:[#allocation11 + $0x38] sm:$0xf0] }
  0x37   :  { %351 = vmatpush.bf16.msra.mxu2 %v685_v35 }
  0x39   :  { %544 = vmatmul.msk.bf16.gmra.mxu0 %vm153_vm1, %v143_v12  ;;  %v698_v12 = vld [vmem:[#allocation11 + $0x34] sm:$0xf0] }
  0x3a   :  { %262 = vmatpush.bf16.msra.mxu1 %v675_v16  ;;  %v636_v14 = vor.u32 %v698_v12, %v635_v11  ;;  %v640_v16 = vor.u32 %v697_v13, %v637_v15 }
  0x3b   :  { %352 = vmatpush.bf16.msra.mxu2 %v684_v36  ;;  %v720_v36 = vld [vmem:[%s1014_s6] ss:$0 sm:$0xff]  ;;  %s909_s6 = smov [#allocation13]  }
  0x3c   :  { %475 = vmatpush.bf16.msra.mxu3 %v636_v14  ;;  %493 = vmatpush.bf16.msrb.mxu0 %v640_v16  ;;  %s517_s21 = sshll.u32 %s909_s6, 4  ;;  %s518_s21 = int_to_ptr.vmem [resolvable:$true] %s517_s21 }
  0x3f   :  { %353 = vmatpush.bf16.msra.mxu2 %v683_v37 }
  0xa6   :  { %v173_v18 = vpop.f32.mrf.mxu0 }
  0xa7   :  { %v174_v22 = vadd.f32 %v718_v20, %v173_v18  ;;  %v696_v18 = vld [vmem:[#allocation11 + $0x24] sm:$0xf0] }
  0xa9   :  { %v182_v26 = vmax.f32 %v174_v22, 0.0  ;;  %v632_v22 = vor.u32 %v695_v19, %v629_v21 }
  0xab   :  { %494 = vmatpush.bf16.msrb.mxu0 %v632_v22 }
  0xae   :  { %v175_v23 = vpop.f32.mrf.mxu0 }
  0xaf   :  { %v176_v24 = vadd.f32 %v718_v20, %v175_v23  ;;  %v619_v23 = vld [vmem:[#allocation11 + $0x10] sm:$0xf] }
  0xb1   :  { %v183_v27 = vmax.f32 %v176_v24, 0.0  ;;  %v694_v24 = vld [vmem:[#allocation11 + $0x14] sm:$0xf0] }
  0xb3   :  { %v185_v28 = vpack.c.bf16 %v183_v27, %v182_v26  ;;  %v620_v26 = vor.u32 %v694_v24, %v619_v23  ;;  %v621_v27 = vld [vmem:[#allocation11 + $0x18] sm:$0xf0] }
  0xb5   :  { %263 = vmatmul.bf16.vlgmr.msra.gmra.mxu1 %v185_v28  ;;  %v624_v28 = vor.u32 %v693_v25, %v621_v27 }
  0xb6   :  { %v178_v29 = vpop.f32.mrf.mxu0 }
  0xb7   :  { %v179_v30 = vadd.f32 %v718_v20, %v178_v29  ;;  %v628_v20 = vor.u32 %v696_v18, %v627_v17  ;;  %495 = vmatpush.bf16.msrb.mxu0 %v624_v28  ;;  %v611_v29 = vld [vmem:[#allocation11] sm:$0xf] }
  0xb9   :  { %v184_v31 = vmax.f32 %v179_v30, 0.0  ;;  %476 = vmatpush.bf16.msra.mxu3 %v628_v20  ;;  %v692_v30 = vld [vmem:[#allocation11 + $0x4] sm:$0xf0] }
  0xbb   :  { %v186_v33 = vpack.c.bf16 %v184_v31, %v184_v31  ;;  %v691_v31 = vld [vmem:[#allocation11 + $0x4] sm:$0xf] }
  0xbd   :  { %477 = vmatpush.bf16.msra.mxu3 %v620_v26 }
  0xbe   :  { %v180_v32 = vpop.f32.mrf.mxu0 }
  0xbf   :  { %v612_v32 = vor.u32 %v692_v30, %v611_v29 }
  0xc1   :  { %478 = vmatpush.bf16.msra.mxu3 %v612_v32 }
  0xc5   :  { %268 = vmatmul.bf16.gmra.mxu1 %v186_v33  ;;  %v613_v33 = vld [vmem:[#allocation11 + $0x8] sm:$0xf0] }
  0xc6   :  { %v616_v34 = vor.u32 %v691_v31, %v613_v33 }
  0xc8   :  { %496 = vmatpush.bf16.msrb.mxu0 %v616_v34 }
 0x132   :  { %v264_v41 = vpop.f32.mrf.mxu1 }
 0x133   :  { %v265_v57 = vadd.f32 %v719_v50, %v264_v41 }
 0x135   :  { %v273_v2 = vmax.f32 %v265_v57, 0.0 }
 0x13a   :  { %v266_v61 = vpop.f32.mrf.mxu1 }
 0x13b   :  { %v267_v0 = vadd.f32 %v719_v50, %v266_v61 }
 0x13d   :  { %v274_v3 = vmax.f32 %v267_v0, 0.0 }
 0x13f   :  { %v276_v5 = vpack.c.bf16 %v274_v3, %v273_v2 }
 0x141   :  { %354 = vmatmul.bf16.vlgmr.msra.gmra.mxu2 %v276_v5 }
 0x142   :  { %v269_v6 = vpop.f32.mrf.mxu1 }
 0x143   :  { %v270_v7 = vadd.f32 %v719_v50, %v269_v6  ;;  %v388_v50 = vperm.slane %v385_v48, 1 }
 0x145   :  { %v275_v8 = vmax.f32 %v270_v7, 0.0 }
 0x147   :  { %v277_v10 = vpack.c.bf16 %v275_v8, %v275_v8 }
 0x14a   :  { %v271_v9 = vpop.f32.mrf.mxu1 }
 0x151   :  { %359 = vmatmul.bf16.gmra.mxu2 %v277_v10 }
 0x1c4   :  { %v355_v35 = vpop.f32.mrf.mxu2 }
 0x1c5   :  { %v356_v37 = vadd.f32 %v720_v36, %v355_v35 }
 0x1c7   :  { %v364_v40 = vmax.f32 %v356_v37, 0.0 }
 0x1cc   :  { %v357_v38 = vpop.f32.mrf.mxu2 }
 0x1cd   :  { %v358_v39 = vadd.f32 %v720_v36, %v357_v38 }
 0x1cf   :  { %v365_v41 = vmax.f32 %v358_v39, 0.0 }
 0x1d1   :  { %v367_v42 = vpack.c.bf16 %v365_v41, %v364_v40 }
 0x1d3   :  { %479 = vmatmul.bf16.vlgmr.msra.gmra.mxu3 %v367_v42  ;;  %497 = vmatmul.bf16.vlgmr.msrb.gmra.mxu0 %v367_v42 }
 0x1d4   :  { %v360_v43 = vpop.f32.mrf.mxu2 }
 0x1d5   :  { %v361_v44 = vadd.f32 %v720_v36, %v360_v43 }
 0x1d7   :  { %v366_v45 = vmax.f32 %v361_v44, 0.0 }
 0x1d9   :  { %v368_v47 = vpack.c.bf16 %v366_v45, %v366_v45 }
 0x1dc   :  { %v362_v46 = vpop.f32.mrf.mxu2 }
 0x1e3   :  { %484 = vmatmul.bf16.gmra.mxu3 %v368_v47  ;;  %502 = vmatmul.bf16.gmra.mxu0 %v368_v47 }
 0x250   :  { %v498_v49 = vpop.f32.mrf.mxu0 }
 0x251   :  { %v499_v53 = vadd.f32 %v498_v49, %v388_v50 }
 0x256   :  { %v480_v52 = vpop.f32.mrf.mxu3 }
 0x257   :  { %v481_v54 = vadd.f32 %v480_v52, %v387_v51 }
 0x258   :  { %v500_v55 = vpop.f32.mrf.mxu0 }
 0x259   :  { %v507_v56 = vpack.c.bf16 %v499_v53, %v481_v54  ;;  %v501_v58 = vadd.f32 %v500_v55, %v388_v50 }
 0x25b   :  { %510 = vst [vmem:[#allocation13] sm:$0xff] %v507_v56 }
 0x25e   :  { %v482_v57 = vpop.f32.mrf.mxu3 }
 0x25f   :  { %v483_v59 = vadd.f32 %v482_v57, %v387_v51 }
 0x260   :  { %v503_v60 = vpop.f32.mrf.mxu0 }
 0x261   :  { %v508_v61 = vpack.c.bf16 %v501_v58, %v483_v59  ;;  %v504_v63 = vadd.f32 %v503_v60, %v388_v50 }
 0x263   :  { %511 = vst [vmem:[#allocation13 + $0x8] sm:$0xff] %v508_v61 }
 0x266   :  { %v485_v62 = vpop.f32.mrf.mxu3 }
 0x267   :  { %v486_v0 = vadd.f32 %v485_v62, %v387_v51 }
 0x268   :  { %v505_v1 = vpop.f32.mrf.mxu0 }
 0x269   :  { %v509_v2 = vpack.c.bf16 %v504_v63, %v486_v0 }
 0x26b   :  { %512 = vst [vmem:[#allocation13 + $0x10] sm:$0xff] %v509_v2 }
 0x26c   :  { %525 = dma.vmem_to_hbm [thread:$0]  %s518_s21, 384, %s520_s1, [#allocation4], %s907_s15, %s907_s15, %s908_s16  }
 0x26e   :  { %v487_v3 = vpop.f32.mrf.mxu3 }
 0x26f   :  { %897 = dma.done.wait [#allocation4], 384  }
 0x270   :  { %898 = vsyncadd [#allocation4], 4294966912 }
 0x271   :  { %530 = vsyncpa [#allocation3], 1 }
 0x272   :  { %531 = vsyncpa [#allocation6], 1 }
 0x273   :  { %532 = vsyncpa [#allocation9], 1 }
 0x274   :  { %533 = vsyncpa [#allocation12], 1 }
 0x275   :  { %534 = vsyncpa [#allocation4], 1 }

</bundles_post_ra>
